<compile_context>
chip_gen: v6e
topology: v6e:2x2x1
jax: 0.10.0
libtpu: 0.0.40
codegen_flags: <defaults>
</compile_context>

<pallas_src>
import functools

import jax
import jax.numpy as jnp
from jax.experimental import pallas as pl
from jax.experimental.pallas import tpu as pltpu

EPS = 1e-5
LANE = 128


def _cdiv(a, b):
    return -(-a // b)


def _round_up(x, m):
    return _cdiv(x, m) * m


def _pick_tile(requested, total):
    """Pick a 128-multiple batch tile; split into >=2 steps for v7x megacore."""
    tile = min(_round_up(requested, LANE), total)
    if tile == total and total >= 2 * LANE:
        tile = _round_up(_cdiv(total, 2), LANE)
    return tile


def _z_kernel(cs_ref, ct_ref, wcs_ref, bcs_ref, wct_ref, bct_ref,
              w1a_ref, w1b_ref, b1_ref, w2_ref, z_ref, part_ref,
              *, valid_b, tile_b):
    """Fused MLP trunk for one batch tile (batch-major activations)."""
    f32 = jnp.float32
    # Branch Linear(13,13) + ReLU (weights pre-transposed to (in, out)).
    cs_h = jnp.maximum(
        jnp.dot(cs_ref[...], wcs_ref[...], preferred_element_type=f32)
        + bcs_ref[...], 0.0)                                    # (tb, 13)
    ct_h = jnp.maximum(
        jnp.dot(ct_ref[...], wct_ref[...], preferred_element_type=f32)
        + bct_ref[...], 0.0)                                    # (tb, 13)
    # Linear(26,13) + ReLU with the concat folded into two (13,13) halves.
    h = jnp.maximum(
        jnp.dot(cs_h, w1a_ref[...], preferred_element_type=f32)
        + jnp.dot(ct_h, w1b_ref[...], preferred_element_type=f32)
        + b1_ref[...], 0.0)                                     # (tb, 13)
    # Linear(13,1): contract w2 (1,13) against h's feature axis so the z row
    # comes out lane-dense (1, tb).  The Linear bias is omitted on purpose:
    # training-mode BatchNorm subtracts the batch mean, cancelling it exactly.
    z = jax.lax.dot_general(w2_ref[...], h, (((1,), (1,)), ((), ())),
                            preferred_element_type=f32)         # (1, tb)
    z_ref[...] = z

    # Per-tile partial sums for the BatchNorm batch statistics; pad / ragged
    # columns (>= valid_b) are masked out so they never contaminate the stats.
    col = pl.program_id(0) * tile_b + jax.lax.broadcasted_iota(
        jnp.int32, z.shape, 1)
    zm = jnp.where(col < valid_b, z, 0.0)
    part_ref[0:1, :] = jnp.broadcast_to(
        jnp.sum(zm, axis=1, keepdims=True), (1, LANE))
    part_ref[1:2, :] = jnp.broadcast_to(
        jnp.sum(zm * zm, axis=1, keepdims=True), (1, LANE))


def _bn_sigmoid_kernel(bn_ref, z_ref, out_ref):
    """BatchNorm1d(1) with precomputed batch stats + Sigmoid for one tile."""
    mean = bn_ref[0]       # SMEM scalars
    inv_std = bn_ref[1]
    gamma = bn_ref[2]
    beta = bn_ref[3]
    y = gamma * (z_ref[...] - mean) * inv_std + beta
    # Numerically stable sigmoid (no overflow in exp).
    ey = jnp.exp(-jnp.abs(y))
    out_ref[...] = jnp.where(y >= 0.0, 1.0 / (1.0 + ey), ey / (1.0 + ey))


@functools.partial(jax.jit, static_argnames=("tile_b",))
def ci_diff_weights_forward(cs, ct, params, *, tile_b=4096):
    """cs, ct: (B, 13) float32. Returns (B, 1) float32."""
    B = cs.shape[0]
    b_pad = _round_up(B, LANE)                 # pad batch only to 128 lanes
    tb = _pick_tile(tile_b, b_pad)             # pass-1 batch tile
    num_tiles = _cdiv(b_pad, tb)               # last tile may be ragged

    cs32 = cs.astype(jnp.float32)
    ct32 = ct.astype(jnp.float32)
    if b_pad != B:
        cs32 = jnp.pad(cs32, ((0, b_pad - B), (0, 0)))
        ct32 = jnp.pad(ct32, ((0, b_pad - B), (0, 0)))

    # Tiny parameter prep (13x13 scale): weights pre-transposed to (in, out),
    # Linear(26,13) split into its cs / ct halves, biases as lane-dense rows.
    wcs_t = params["cs_w"].T.astype(jnp.float32)            # (13, 13)
    wct_t = params["ct_w"].T.astype(jnp.float32)            # (13, 13)
    w1a_t = params["w1"][:, :13].T.astype(jnp.float32)      # (13, 13)
    w1b_t = params["w1"][:, 13:].T.astype(jnp.float32)      # (13, 13)
    bcs = params["cs_b"].reshape(1, 13).astype(jnp.float32)
    bct = params["ct_b"].reshape(1, 13).astype(jnp.float32)
    b1 = params["b1"].reshape(1, 13).astype(jnp.float32)
    w2 = params["w2"].reshape(1, 13).astype(jnp.float32)
    # params["b2"] is intentionally unused: BN's batch-mean subtraction
    # cancels the Linear(13,1) bias exactly in the forward output.

    const = lambda i: (0, 0)
    row_tiled = lambda i: (0, i)
    batch_tiled = lambda i: (i, 0)

    # Pass 1: fused MLP trunk -> lane-dense z (1, b_pad) + per-tile BN partials.
    z_pad, partials = pl.pallas_call(
        functools.partial(_z_kernel, valid_b=B, tile_b=tb),
        out_shape=(jax.ShapeDtypeStruct((1, b_pad), jnp.float32),
                   jax.ShapeDtypeStruct((2, num_tiles * LANE), jnp.float32)),
        grid_spec=pltpu.PrefetchScalarGridSpec(
            num_scalar_prefetch=0,
            grid=(num_tiles,),
            in_specs=[
                pl.BlockSpec((tb, 13), batch_tiled),   # cs  (batch-major)
                pl.BlockSpec((tb, 13), batch_tiled),   # ct  (batch-major)
                pl.BlockSpec((13, 13), const),         # cs_linear weight^T
                pl.BlockSpec((1, 13), const),          # cs_linear bias
                pl.BlockSpec((13, 13), const),         # ct_linear weight^T
                pl.BlockSpec((1, 13), const),          # ct_linear bias
                pl.BlockSpec((13, 13), const),         # Linear(26,13) cs half^T
                pl.BlockSpec((13, 13), const),         # Linear(26,13) ct half^T
                pl.BlockSpec((1, 13), const),          # Linear(26,13) bias
                pl.BlockSpec((1, 13), const),          # Linear(13,1) weight
            ],
            out_specs=[
                pl.BlockSpec((1, tb), row_tiled),      # z (lane-dense)
                pl.BlockSpec((2, LANE), row_tiled),    # (sum, sumsq) partials
            ],
        ),
        compiler_params=pltpu.CompilerParams(
            dimension_semantics=("parallel",),
            vmem_limit_bytes=32 * 1024 * 1024,
        ),
    )(cs32, ct32, wcs_t, bcs, wct_t, bct, w1a_t, w1b_t, b1, w2)

    # BatchNorm batch statistics from the per-tile partials (biased variance).
    tile_vals = partials.reshape(2, num_tiles, LANE)[:, :, 0]  # (2, num_tiles)
    mean = jnp.sum(tile_vals[0]) / B
    var = jnp.maximum(jnp.sum(tile_vals[1]) / B - mean * mean, 0.0)
    inv_std = jax.lax.rsqrt(var + EPS)
    bn = jnp.stack([mean, inv_std, params["gamma"][0],
                    params["beta"][0]]).astype(jnp.float32)    # (4,) -> SMEM

    # Pass 2: normalize + affine + sigmoid.  It moves only ~8 B/elem, so it
    # gets a much larger tile than pass 1 (still split for v7x megacore).
    tb2 = _pick_tile(32768, b_pad)
    num_tiles2 = _cdiv(b_pad, tb2)
    out_pad = pl.pallas_call(
        _bn_sigmoid_kernel,
        out_shape=jax.ShapeDtypeStruct((1, b_pad), jnp.float32),
        grid_spec=pltpu.PrefetchScalarGridSpec(
            num_scalar_prefetch=0,
            grid=(num_tiles2,),
            in_specs=[
                pl.BlockSpec(memory_space=pltpu.MemorySpace.SMEM),  # BN scalars
                pl.BlockSpec((1, tb2), row_tiled),
            ],
            out_specs=pl.BlockSpec((1, tb2), row_tiled),
        ),
        compiler_params=pltpu.CompilerParams(
            dimension_semantics=("parallel",)),
    )(bn, z_pad)

    return out_pad[0, :B].reshape(B, 1)


def init_params(key):
    """PyTorch-shaped parameters: Linear weight (out, in), bias (out,)."""
    keys = jax.random.split(key, 8)

    def lin(kw, kb, fan_in, fan_out):
        bound = 1.0 / jnp.sqrt(fan_in)
        w = jax.random.uniform(kw, (fan_out, fan_in), jnp.float32, -bound, bound)
        b = jax.random.uniform(kb, (fan_out,), jnp.float32, -bound, bound)
        return w, b

    cs_w, cs_b = lin(keys[0], keys[1], 13, 13)   # cs_linear Linear(13,13)
    ct_w, ct_b = lin(keys[2], keys[3], 13, 13)   # ct_linear Linear(13,13)
    w1, b1 = lin(keys[4], keys[5], 26, 13)       # Linear(26,13)
    w2, b2 = lin(keys[6], keys[7], 13, 1)        # Linear(13,1)
    gamma = jnp.ones((1,), jnp.float32)          # BatchNorm1d(1) defaults
    beta = jnp.zeros((1,), jnp.float32)
    return dict(cs_w=cs_w, cs_b=cs_b, ct_w=ct_w, ct_b=ct_b,
                w1=w1, b1=b1, w2=w2, b2=b2, gamma=gamma, beta=beta)


def reference_forward(cs, ct, p):
    """Pure-JAX reference mirroring the PyTorch module (training-mode BN)."""
    cs_h = jnp.maximum(cs @ p["cs_w"].T + p["cs_b"], 0.0)
    ct_h = jnp.maximum(ct @ p["ct_w"].T + p["ct_b"], 0.0)
    xcat = jnp.concatenate([cs_h, ct_h], axis=1)
    h = jnp.maximum(xcat @ p["w1"].T + p["b1"], 0.0)
    z = h @ p["w2"].T + p["b2"]                              # (B, 1)
    mean = jnp.mean(z, axis=0, keepdims=True)
    var = jnp.mean((z - mean) ** 2, axis=0, keepdims=True)
    z_hat = (z - mean) * jax.lax.rsqrt(var + EPS)
    return jax.nn.sigmoid(p["gamma"] * z_hat + p["beta"])


if __name__ == "__main__":
    key = jax.random.PRNGKey(0)
    k_cs, k_ct, k_cs2, k_ct2, k_params = jax.random.split(key, 5)
    params = init_params(k_params)

    # Small batch: single 128-wide tile, batch padded 8 -> 128.
    B = 8
    cs = jax.random.normal(k_cs, (B, 13), jnp.float32)
    ct = jax.random.normal(k_ct, (B, 13), jnp.float32)
    out = jax.block_until_ready(ci_diff_weights_forward(cs, ct, params))
    ref = reference_forward(cs, ct, params)
    assert out.shape == (B, 1), out.shape
    assert jnp.allclose(out, ref, atol=5e-5, rtol=1e-4), (out, ref)

    # Non-multiple-of-128 batch: exercises padding, the v7x >=2-step split and
    # the ragged last tile (masked BN partials / masked boundary writes).
    B2 = 300
    cs2 = jax.random.normal(k_cs2, (B2, 13), jnp.float32)
    ct2 = jax.random.normal(k_ct2, (B2, 13), jnp.float32)
    out2 = jax.block_until_ready(ci_diff_weights_forward(cs2, ct2, params))
    ref2 = reference_forward(cs2, ct2, params)
    assert out2.shape == (B2, 1), out2.shape
    assert jnp.allclose(out2, ref2, atol=5e-5, rtol=1e-4), (out2, ref2)

    print("KERNEL_OK")
</pallas_src>

<mosaic_0001>
module attributes {stable_mosaic.version = 11 : i64} {
  func.func @_z_kernel(%arg0: i32, %arg1: memref<128x13xf32, #tpu.memory_space<vmem>>, %arg2: memref<128x13xf32, #tpu.memory_space<vmem>>, %arg3: memref<13x13xf32, #tpu.memory_space<vmem>>, %arg4: memref<1x13xf32, #tpu.memory_space<vmem>>, %arg5: memref<13x13xf32, #tpu.memory_space<vmem>>, %arg6: memref<1x13xf32, #tpu.memory_space<vmem>>, %arg7: memref<13x13xf32, #tpu.memory_space<vmem>>, %arg8: memref<13x13xf32, #tpu.memory_space<vmem>>, %arg9: memref<1x13xf32, #tpu.memory_space<vmem>>, %arg10: memref<1x13xf32, #tpu.memory_space<vmem>>, %arg11: memref<1x128xf32, #tpu.memory_space<vmem>>, %arg12: memref<2x128xf32, #tpu.memory_space<vmem>>) attributes {dimension_semantics = [#tpu.dimension_semantics<parallel>], iteration_bounds = array<i64: 1>, scalar_prefetch = 0 : i64, scratch_operands = 0 : i64, tpu.core_type = #tpu.core_type<tc>, window_params = [{transform_indices = @transform_0, window_bounds = array<i64: 128, 13>}, {transform_indices = @transform_1, window_bounds = array<i64: 128, 13>}, {pipeline_mode = #tpu.pipeline_mode<synchronous>, transform_indices = @transform_2, window_bounds = array<i64: 13, 13>}, {pipeline_mode = #tpu.pipeline_mode<synchronous>, transform_indices = @transform_3, window_bounds = array<i64: 1, 13>}, {pipeline_mode = #tpu.pipeline_mode<synchronous>, transform_indices = @transform_4, window_bounds = array<i64: 13, 13>}, {pipeline_mode = #tpu.pipeline_mode<synchronous>, transform_indices = @transform_5, window_bounds = array<i64: 1, 13>}, {pipeline_mode = #tpu.pipeline_mode<synchronous>, transform_indices = @transform_6, window_bounds = array<i64: 13, 13>}, {pipeline_mode = #tpu.pipeline_mode<synchronous>, transform_indices = @transform_7, window_bounds = array<i64: 13, 13>}, {pipeline_mode = #tpu.pipeline_mode<synchronous>, transform_indices = @transform_8, window_bounds = array<i64: 1, 13>}, {pipeline_mode = #tpu.pipeline_mode<synchronous>, transform_indices = @transform_9, window_bounds = array<i64: 1, 13>}, {transform_indices = @transform_10, window_bounds = array<i64: 1, 128>}, {transform_indices = @transform_11, window_bounds = array<i64: 2, 128>}]} {
    %c0 = arith.constant 0 : index
    %c0_0 = arith.constant 0 : index
    %0 = vector.load %arg1[%c0, %c0_0] : memref<128x13xf32, #tpu.memory_space<vmem>>, vector<128x13xf32>
    %c0_1 = arith.constant 0 : index
    %c0_2 = arith.constant 0 : index
    %1 = vector.load %arg3[%c0_1, %c0_2] : memref<13x13xf32, #tpu.memory_space<vmem>>, vector<13x13xf32>
    %cst = arith.constant dense<0.000000e+00> : vector<128x13xf32>
    %2 = tpu.matmul %0, %1, %cst {dimension_numbers = #tpu.dot_dimension_numbers<[1], [0], [0], [1], [0, 0, 1, 1], [], []>} : vector<128x13xf32>, vector<13x13xf32>, vector<128x13xf32> -> vector<128x13xf32>
    %c0_3 = arith.constant 0 : index
    %c0_4 = arith.constant 0 : index
    %3 = vector.load %arg4[%c0_3, %c0_4] : memref<1x13xf32, #tpu.memory_space<vmem>>, vector<1x13xf32>
    %4 = vector.broadcast %3 : vector<1x13xf32> to vector<128x13xf32>
    %5 = arith.addf %2, %4 : vector<128x13xf32>
    %cst_5 = arith.constant 0.000000e+00 : f32
    %6 = vector.broadcast %cst_5 : f32 to vector<128x13xf32>
    %7 = arith.maximumf %5, %6 : vector<128x13xf32>
    %c0_6 = arith.constant 0 : index
    %c0_7 = arith.constant 0 : index
    %8 = vector.load %arg2[%c0_6, %c0_7] : memref<128x13xf32, #tpu.memory_space<vmem>>, vector<128x13xf32>
    %c0_8 = arith.constant 0 : index
    %c0_9 = arith.constant 0 : index
    %9 = vector.load %arg5[%c0_8, %c0_9] : memref<13x13xf32, #tpu.memory_space<vmem>>, vector<13x13xf32>
    %cst_10 = arith.constant dense<0.000000e+00> : vector<128x13xf32>
    %10 = tpu.matmul %8, %9, %cst_10 {dimension_numbers = #tpu.dot_dimension_numbers<[1], [0], [0], [1], [0, 0, 1, 1], [], []>} : vector<128x13xf32>, vector<13x13xf32>, vector<128x13xf32> -> vector<128x13xf32>
    %c0_11 = arith.constant 0 : index
    %c0_12 = arith.constant 0 : index
    %11 = vector.load %arg6[%c0_11, %c0_12] : memref<1x13xf32, #tpu.memory_space<vmem>>, vector<1x13xf32>
    %12 = vector.broadcast %11 : vector<1x13xf32> to vector<128x13xf32>
    %13 = arith.addf %10, %12 : vector<128x13xf32>
    %cst_13 = arith.constant 0.000000e+00 : f32
    %14 = vector.broadcast %cst_13 : f32 to vector<128x13xf32>
    %15 = arith.maximumf %13, %14 : vector<128x13xf32>
    %c0_14 = arith.constant 0 : index
    %c0_15 = arith.constant 0 : index
    %16 = vector.load %arg7[%c0_14, %c0_15] : memref<13x13xf32, #tpu.memory_space<vmem>>, vector<13x13xf32>
    %cst_16 = arith.constant dense<0.000000e+00> : vector<128x13xf32>
    %17 = tpu.matmul %7, %16, %cst_16 {dimension_numbers = #tpu.dot_dimension_numbers<[1], [0], [0], [1], [0, 0, 1, 1], [], []>} : vector<128x13xf32>, vector<13x13xf32>, vector<128x13xf32> -> vector<128x13xf32>
    %c0_17 = arith.constant 0 : index
    %c0_18 = arith.constant 0 : index
    %18 = vector.load %arg8[%c0_17, %c0_18] : memref<13x13xf32, #tpu.memory_space<vmem>>, vector<13x13xf32>
    %cst_19 = arith.constant dense<0.000000e+00> : vector<128x13xf32>
    %19 = tpu.matmul %15, %18, %cst_19 {dimension_numbers = #tpu.dot_dimension_numbers<[1], [0], [0], [1], [0, 0, 1, 1], [], []>} : vector<128x13xf32>, vector<13x13xf32>, vector<128x13xf32> -> vector<128x13xf32>
    %20 = arith.addf %17, %19 : vector<128x13xf32>
    %c0_20 = arith.constant 0 : index
    %c0_21 = arith.constant 0 : index
    %21 = vector.load %arg9[%c0_20, %c0_21] : memref<1x13xf32, #tpu.memory_space<vmem>>, vector<1x13xf32>
    %22 = vector.broadcast %21 : vector<1x13xf32> to vector<128x13xf32>
    %23 = arith.addf %20, %22 : vector<128x13xf32>
    %cst_22 = arith.constant 0.000000e+00 : f32
    %24 = vector.broadcast %cst_22 : f32 to vector<128x13xf32>
    %25 = arith.maximumf %23, %24 : vector<128x13xf32>
    %c0_23 = arith.constant 0 : index
    %c0_24 = arith.constant 0 : index
    %26 = vector.load %arg10[%c0_23, %c0_24] : memref<1x13xf32, #tpu.memory_space<vmem>>, vector<1x13xf32>
    %cst_25 = arith.constant dense<0.000000e+00> : vector<1x128xf32>
    %27 = tpu.matmul %26, %25, %cst_25 {dimension_numbers = #tpu.dot_dimension_numbers<[1], [1], [0], [0], [0, 0, 1, 0], [], []>} : vector<1x13xf32>, vector<128x13xf32>, vector<1x128xf32> -> vector<1x128xf32>
    %c0_26 = arith.constant 0 : index
    %c0_27 = arith.constant 0 : index
    %28 = vector.load %arg11[%c0_26, %c0_27] : memref<1x128xf32, #tpu.memory_space<vmem>>, vector<1x128xf32>
    tpu.vector_store %arg11[%c0_26, %c0_27], %27 {strides = array<i32>} : memref<1x128xf32, #tpu.memory_space<vmem>>, vector<1x128xf32>,
    %c128_i32 = arith.constant 128 : i32
    %29 = arith.muli %arg0, %c128_i32 : i32
    %30 = tpu.iota {dimensions = array<i32: 1>} : vector<1x128xi32>
    %31 = vector.broadcast %29 : i32 to vector<1x128xi32>
    %32 = arith.addi %31, %30 : vector<1x128xi32>
    %c8_i32 = arith.constant 8 : i32
    %33 = vector.broadcast %c8_i32 : i32 to vector<1x128xi32>
    %34 = arith.cmpi slt, %32, %33 : vector<1x128xi32>
    %cst_28 = arith.constant 0.000000e+00 : f32
    %35 = vector.broadcast %cst_28 : f32 to vector<1x128xf32>
    %36 = arith.select %34, %27, %35 : vector<1x128xi1>, vector<1x128xf32>
    %cst_29 = arith.constant dense<0.000000e+00> : vector<1xf32>
    %37 = vector.multi_reduction <add>, %36, %cst_29 [1] : vector<1x128xf32> to vector<1xf32>
    %38 = vector.shape_cast %37 : vector<1xf32> to vector<1x1xf32>
    %39 = vector.shape_cast %38 : vector<1x1xf32> to vector<1x1xf32>
    %40 = vector.broadcast %39 : vector<1x1xf32> to vector<1x128xf32>
    %c0_30 = arith.constant 0 : index
    %c0_31 = arith.constant 0 : index
    %41 = vector.load %arg12[%c0_30, %c0_31] : memref<2x128xf32, #tpu.memory_space<vmem>>, vector<1x128xf32>
    tpu.vector_store %arg12[%c0_30, %c0_31], %40 {strides = array<i32>} : memref<2x128xf32, #tpu.memory_space<vmem>>, vector<1x128xf32>,
    %42 = arith.mulf %36, %36 : vector<1x128xf32>
    %cst_32 = arith.constant dense<0.000000e+00> : vector<1xf32>
    %43 = vector.multi_reduction <add>, %42, %cst_32 [1] : vector<1x128xf32> to vector<1xf32>
    %44 = vector.shape_cast %43 : vector<1xf32> to vector<1x1xf32>
    %45 = vector.shape_cast %44 : vector<1x1xf32> to vector<1x1xf32>
    %46 = vector.broadcast %45 : vector<1x1xf32> to vector<1x128xf32>
    %c1 = arith.constant 1 : index
    %c0_33 = arith.constant 0 : index
    %47 = vector.load %arg12[%c1, %c0_33] : memref<2x128xf32, #tpu.memory_space<vmem>>, vector<1x128xf32>
    tpu.vector_store %arg12[%c1, %c0_33], %46 {strides = array<i32>} : memref<2x128xf32, #tpu.memory_space<vmem>>, vector<1x128xf32>,
    return
  }
  func.func @transform_0(%arg0: i32) -> (i32, i32) {
    %c0_i32 = arith.constant 0 : i32
    %c0_i32_0 = arith.constant 0 : i32
    return %arg0, %c0_i32 : i32, i32
  }
  func.func @transform_1(%arg0: i32) -> (i32, i32) {
    %c0_i32 = arith.constant 0 : i32
    %c0_i32_0 = arith.constant 0 : i32
    return %arg0, %c0_i32 : i32, i32
  }
  func.func @transform_2(%arg0: i32) -> (i32, i32) {
    %c0_i32 = arith.constant 0 : i32
    %c0_i32_0 = arith.constant 0 : i32
    %c0_i32_1 = arith.constant 0 : i32
    return %c0_i32, %c0_i32_0 : i32, i32
  }
  func.func @transform_3(%arg0: i32) -> (i32, i32) {
    %c0_i32 = arith.constant 0 : i32
    %c0_i32_0 = arith.constant 0 : i32
    %c0_i32_1 = arith.constant 0 : i32
    return %c0_i32, %c0_i32_0 : i32, i32
  }
  func.func @transform_4(%arg0: i32) -> (i32, i32) {
    %c0_i32 = arith.constant 0 : i32
    %c0_i32_0 = arith.constant 0 : i32
    %c0_i32_1 = arith.constant 0 : i32
    return %c0_i32, %c0_i32_0 : i32, i32
  }
  func.func @transform_5(%arg0: i32) -> (i32, i32) {
    %c0_i32 = arith.constant 0 : i32
    %c0_i32_0 = arith.constant 0 : i32
    %c0_i32_1 = arith.constant 0 : i32
    return %c0_i32, %c0_i32_0 : i32, i32
  }
  func.func @transform_6(%arg0: i32) -> (i32, i32) {
    %c0_i32 = arith.constant 0 : i32
    %c0_i32_0 = arith.constant 0 : i32
    %c0_i32_1 = arith.constant 0 : i32
    return %c0_i32, %c0_i32_0 : i32, i32
  }
  func.func @transform_7(%arg0: i32) -> (i32, i32) {
    %c0_i32 = arith.constant 0 : i32
    %c0_i32_0 = arith.constant 0 : i32
    %c0_i32_1 = arith.constant 0 : i32
    return %c0_i32, %c0_i32_0 : i32, i32
  }
  func.func @transform_8(%arg0: i32) -> (i32, i32) {
    %c0_i32 = arith.constant 0 : i32
    %c0_i32_0 = arith.constant 0 : i32
    %c0_i32_1 = arith.constant 0 : i32
    return %c0_i32, %c0_i32_0 : i32, i32
  }
  func.func @transform_9(%arg0: i32) -> (i32, i32) {
    %c0_i32 = arith.constant 0 : i32
    %c0_i32_0 = arith.constant 0 : i32
    %c0_i32_1 = arith.constant 0 : i32
    return %c0_i32, %c0_i32_0 : i32, i32
  }
  func.func @transform_10(%arg0: i32) -> (i32, i32) {
    %c0_i32 = arith.constant 0 : i32
    %c0_i32_0 = arith.constant 0 : i32
    return %c0_i32, %arg0 : i32, i32
  }
  func.func @transform_11(%arg0: i32) -> (i32, i32) {
    %c0_i32 = arith.constant 0 : i32
    %c0_i32_0 = arith.constant 0 : i32
    return %c0_i32, %arg0 : i32, i32
  }
}

module attributes {stable_mosaic.version = 11 : i64} {
  func.func @_bn_sigmoid_kernel(%arg0: i32, %arg1: memref<4xf32, #tpu.memory_space<smem>>, %arg2: memref<1x128xf32, #tpu.memory_space<vmem>>, %arg3: memref<1x128xf32, #tpu.memory_space<vmem>>) attributes {dimension_semantics = [#tpu.dimension_semantics<parallel>], iteration_bounds = array<i64: 1>, scalar_prefetch = 0 : i64, scratch_operands = 0 : i64, tpu.core_type = #tpu.core_type<tc>, window_params = [{transform_indices = @transform_0, window_bounds = array<i64: 4>}, {transform_indices = @transform_1, window_bounds = array<i64: 1, 128>}, {transform_indices = @transform_2, window_bounds = array<i64: 1, 128>}]} {
    %c0 = arith.constant 0 : index
    %0 = memref.load %arg1[%c0] : memref<4xf32, #tpu.memory_space<smem>>
    %c1 = arith.constant 1 : index
    %1 = memref.load %arg1[%c1] : memref<4xf32, #tpu.memory_space<smem>>
    %c2 = arith.constant 2 : index
    %2 = memref.load %arg1[%c2] : memref<4xf32, #tpu.memory_space<smem>>
    %c3 = arith.constant 3 : index
    %3 = memref.load %arg1[%c3] : memref<4xf32, #tpu.memory_space<smem>>
    %c0_0 = arith.constant 0 : index
    %c0_1 = arith.constant 0 : index
    %4 = vector.load %arg2[%c0_0, %c0_1] : memref<1x128xf32, #tpu.memory_space<vmem>>, vector<1x128xf32>
    %5 = vector.broadcast %0 : f32 to vector<1x128xf32>
    %6 = arith.subf %4, %5 : vector<1x128xf32>
    %7 = vector.broadcast %2 : f32 to vector<1x128xf32>
    %8 = arith.mulf %7, %6 : vector<1x128xf32>
    %9 = vector.broadcast %1 : f32 to vector<1x128xf32>
    %10 = arith.mulf %8, %9 : vector<1x128xf32>
    %11 = vector.broadcast %3 : f32 to vector<1x128xf32>
    %12 = arith.addf %10, %11 : vector<1x128xf32>
    %13 = math.absf %12 : vector<1x128xf32>
    %cst = arith.constant 0.000000e+00 : f32
    %14 = vector.broadcast %cst : f32 to vector<1x128xf32>
    %15 = arith.subf %14, %13 : vector<1x128xf32>
    %16 = math.exp %15 : vector<1x128xf32>
    %cst_2 = arith.constant 0.000000e+00 : f32
    %17 = vector.broadcast %cst_2 : f32 to vector<1x128xf32>
    %18 = arith.cmpf oge, %12, %17 : vector<1x128xf32>
    %cst_3 = arith.constant 1.000000e+00 : f32
    %19 = vector.broadcast %cst_3 : f32 to vector<1x128xf32>
    %20 = arith.addf %19, %16 : vector<1x128xf32>
    %cst_4 = arith.constant 1.000000e+00 : f32
    %21 = vector.broadcast %cst_4 : f32 to vector<1x128xf32>
    %22 = arith.divf %21, %20 : vector<1x128xf32>
    %cst_5 = arith.constant 1.000000e+00 : f32
    %23 = vector.broadcast %cst_5 : f32 to vector<1x128xf32>
    %24 = arith.addf %23, %16 : vector<1x128xf32>
    %25 = arith.divf %16, %24 : vector<1x128xf32>
    %26 = arith.select %18, %22, %25 : vector<1x128xi1>, vector<1x128xf32>
    %c0_6 = arith.constant 0 : index
    %c0_7 = arith.constant 0 : index
    %27 = vector.load %arg3[%c0_6, %c0_7] : memref<1x128xf32, #tpu.memory_space<vmem>>, vector<1x128xf32>
    tpu.vector_store %arg3[%c0_6, %c0_7], %26 {strides = array<i32>} : memref<1x128xf32, #tpu.memory_space<vmem>>, vector<1x128xf32>,
    return
  }
  func.func @transform_0(%arg0: i32) -> i32 {
    %c0_i32 = arith.constant 0 : i32
    %c0_i32_0 = arith.constant 0 : i32
    return %c0_i32 : i32
  }
  func.func @transform_1(%arg0: i32) -> (i32, i32) {
    %c0_i32 = arith.constant 0 : i32
    %c0_i32_0 = arith.constant 0 : i32
    return %c0_i32, %arg0 : i32, i32
  }
  func.func @transform_2(%arg0: i32) -> (i32, i32) {
    %c0_i32 = arith.constant 0 : i32
    %c0_i32_0 = arith.constant 0 : i32
    return %c0_i32, %arg0 : i32, i32
  }
}

</mosaic_0001>

<bundles_post_ra>
// kernel: ci_diff_weights_forward.3
= control target key start
LH: loop header
LB: loop body
LE: loop exit
PB: predicated region body
PF: predicated region fallthrough
CT: control target
= control target key end

     0   :  { %7 = vsyncpa [#allocation3], 0  ;;  %s100_s0 = inlined_call_operand.vmem [shape: f32[4], index: 0, kind: input, shape index: {}]   ;;  %s101_s1 = inlined_call_operand.vmem [shape: f32[1,128], index: 1, kind: input, shape index: {}]   ;;  %s102_s2 = inlined_call_operand.vmem [shape: f32[1,128], index: 2, kind: output, shape index: {}]  }
   0x1   :  { %s14_s11 = sshll.u32 %s100_s0, 4  ;;  %s15_s11 = int_to_ptr.vmem [resolvable:$true] %s14_s11 }
   0x2   :  { %s61_s12 = scalar_lea.vmem %s15_s11, 16  ;;  %p66_p1 = scmp.lt.s32.totalorder %s15_s11, %s15_s11 }
   0x3   :  { %p62_p0 = scmp.ne.s32.totalorder %s15_s11, %s61_s12  ;;  %p67_p2 = scmp.lt.s32.totalorder %s61_s12, %s61_s12 }
   0x5   :  { %p68_p3 = por %p67_p2, %p66_p1 }
   0x7   :  { %p69_p4 = pnand %p68_p3, %p62_p0 }
   0x9   :  { %72 = shalt.err (!%p69_p4)
}
   0xa   :  { %s75_s13 = smov [#allocation2]  }
   0xb   :  { %17 = dma.vmem_to_smem %s15_s11, 16, %s75_s13, [#allocation3]  }
   0xc   :  { %73 = dma.done.wait [#allocation3], 16  }
   0xd   :  { %74 = vsyncadd [#allocation3], 4294967280 }
   0xe   :  { %23 = sfence }
   0xf   :  { %s24_s14 = sld [smem:[#allocation2]]  ;;  %v28_v0 = vld [vmem:[%s101_s1] sm:$0x1] }
  0x10   :  { %s53_s15 = sld [smem:[#allocation2 + $0x1]] }
  0x11   :  { %s54_s16 = sld [smem:[#allocation2 + $0x2]] }
  0x12   :  { %s55_s17 = sld [smem:[#allocation2 + $0x3]] }
  0x15   :  { %v29_v1 = vstv %s24_s14 }
  0x16   :  { %v30_v2 = vsub.f32 %v28_v0, %v29_v1  ;;  %v33_v4 = vstv %s53_s15 }
  0x17   :  { %v31_v3 = vstv %s54_s16 }
  0x18   :  { %v32_v5 = vmul.f32 %v31_v3, %v30_v2  ;;  %v35_v6 = vstv %s55_s17 }
  0x1a   :  { %v34_v7 = vmul.f32 %v33_v4, %v32_v5 }
  0x1c   :  { %v36_v8 = vadd.f32 %v35_v6, %v34_v7 }
  0x1e   :  { %v37_v9 = vand.u32 2147483647, %v36_v8  ;;  %vm41_vm0 = vcmp.ge.f32.partialorder %v36_v8, 0.0 }
  0x20   :  { %v38_v10 = vsub.f32 0.0, %v37_v9 }
  0x22   :  { %v39_v11 = vmul.f32 1.442695, %v38_v10 }
  0x24   :  { %57 = vpow2.f32 %v39_v11 }
  0x31   :  { %v58_v12 = vpop.eup %57 }
  0x32   :  { %v42_v13 = vadd.f32 1.0, %v58_v12 }
  0x34   :  { %59 = vrcp.f32 %v42_v13 }
  0x41   :  { %v60_v14 = vpop.eup %59 }
  0x42   :  { %v45_v15 = vmul.f32 %v60_v14, %v58_v12 }
  0x44   :  { %v46_v16 = vsel %vm41_vm0, %v60_v14, %v45_v15 }
  0x45   :  { %47 = vst [vmem:[%s102_s2] sm:$0x1] %v46_v16 }
  0x46   :  { %52 = vsyncpa [#allocation3], 1 }

// kernel: ci_diff_weights_forward.2
= control target key start
LH: loop header
LB: loop body
LE: loop exit
PB: predicated region body
PF: predicated region fallthrough
CT: control target
= control target key end

     0   :  { %vm111_vm0 = vcmask 1044480   ;;  %vm62_vm1 = vcmask 105472   ;;  %vm1427_vm2 = vmmov 0   ;;  %vm1078_vm4 = vcmask 1040384   ;;  %s1821_s2 = inlined_call_operand.vmem [shape: f32[13,13], index: 2, kind: input, shape index: {}]   ;;  %s1822_s0 = inlined_call_operand.vmem [shape: f32[128,13], index: 0, kind: input, shape index: {}]   ;;  %s1823_s4 = inlined_call_operand.vmem [shape: f32[13,13], index: 4, kind: input, shape index: {}]   ;;  %s1824_s6 = inlined_call_operand.vmem [shape: f32[13,13], index: 6, kind: input, shape index: {}]   ;;  %s1825_s1 = inlined_call_operand.vmem [shape: f32[128,13], index: 1, kind: input, shape index: {}]   ;;  %s1826_s7 = inlined_call_operand.vmem [shape: f32[13,13], index: 7, kind: input, shape index: {}]   ;;  %s1827_s3 = inlined_call_operand.vmem [shape: f32[1,13], index: 3, kind: input, shape index: {}]   ;;  %s1828_s5 = inlined_call_operand.vmem [shape: f32[1,13], index: 5, kind: input, shape index: {}]   ;;  %s1829_s8 = inlined_call_operand.vmem [shape: f32[1,13], index: 8, kind: input, shape index: {}]   ;;  %s1830_s9 = inlined_call_operand.vmem [shape: f32[1,13], index: 9, kind: input, shape index: {}]   ;;  %s1831_s10 = inlined_call_operand.vmem [shape: f32[1,128], index: 10, kind: output, shape index: {0}]   ;;  %s1832_s11 = inlined_call_operand.vmem [shape: f32[2,128], index: 11, kind: output, shape index: {1}]  }
   0x1   :  { %v54_v0 = vld [vmem:[%s1821_s2 + $0x8] sm:$0x1f]  ;;  %v53_v1 = vld [vmem:[%s1821_s2] sm:$0xff]  ;;  %v39_v7 = vld [vmem:[%s1822_s0 + $0x10] sm:$0xff] }
   0x2   :  { %1273 = vmatprep.subr.msk.mxu0 %vm111_vm0, %v54_v0  ;;  %1420 = vmatprep.subr.msk.mxu1 %vm111_vm0, %v54_v0  ;;  %v37_v2 = vld [vmem:[%s1822_s0] sm:$0xff]  ;;  %v38_v4 = vld [vmem:[%s1822_s0 + $0x8] sm:$0xff]  ;;  %v47_v8 = vld [vmem:[%s1822_s0 + $0x50] sm:$0xff] }
   0x3   :  { %1274 = vmatpush3.msk.msra.mxu0 %vm111_vm0, %v54_v0  ;;  %1422 = vmatpush3.msk.msra.mxu1 %vm111_vm0, %v54_v0  ;;  %v45_v3 = vld [vmem:[%s1822_s0 + $0x40] sm:$0xff]  ;;  %v46_v5 = vld [vmem:[%s1822_s0 + $0x48] sm:$0xff]  ;;  %v40_v10 = vld [vmem:[%s1822_s0 + $0x18] sm:$0xff] }
   0x4   :  { %1275 = vmatprep.subr.mxu0 %v53_v1  ;;  %1421 = vmatprep.subr.mxu1 %v53_v1  ;;  %v293_v6 = vld [vmem:[%s1823_s4 + $0x8] sm:$0x1f]  ;;  %v292_v9 = vld [vmem:[%s1823_s4] sm:$0xff]  ;;  %v48_v11 = vld [vmem:[%s1822_s0 + $0x58] sm:$0xff] }
   0x5   :  { %1276 = vmatpush3.msra.mxu0 %v53_v1  ;;  %1423 = vmatpush3.msra.mxu1 %v53_v1  ;;  %v41_v12 = vld [vmem:[%s1822_s0 + $0x20] sm:$0xff]  ;;  %v42_v14 = vld [vmem:[%s1822_s0 + $0x28] sm:$0xff]  ;;  %v43_v16 = vld [vmem:[%s1822_s0 + $0x30] sm:$0xff] }
   0x6   :  { %1277 = vmatprep.mubr.msk.f32.mxu0 %vm62_vm1, %v37_v2  ;;  %1289 = vmatprep.mubr.msk.f32.mxu1 %vm62_vm1, %v45_v3  ;;  %v49_v13 = vld [vmem:[%s1822_s0 + $0x60] sm:$0xff]  ;;  %v50_v15 = vld [vmem:[%s1822_s0 + $0x68] sm:$0xff]  ;;  %v51_v17 = vld [vmem:[%s1822_s0 + $0x70] sm:$0xff] }
   0x7   :  { %1278 = vmatmul.mubr.msk.f32.vlgmr.msra.gmra.mxu0 %vm62_vm1, %v38_v4  ;;  %1290 = vmatmul.mubr.msk.f32.vlgmr.msra.gmra.mxu1 %vm62_vm1, %v46_v5  ;;  %v514_v18 = vld [vmem:[%s1824_s6 + $0x8] sm:$0x1f]  ;;  %v44_v19 = vld [vmem:[%s1822_s0 + $0x38] sm:$0xff]  ;;  %v276_v21 = vld [vmem:[%s1825_s1] sm:$0xff] }
   0x8   :  { %1301 = vmatprep.subr.msk.mxu1 %vm111_vm0, %v293_v6  ;;  %1280 = vmatprep.mubr.msk.f32.mxu0 %vm62_vm1, %v39_v7  ;;  %v52_v20 = vld [vmem:[%s1822_s0 + $0x78] sm:$0xff]  ;;  %v277_v22 = vld [vmem:[%s1825_s1 + $0x8] sm:$0xff]  ;;  %v278_v23 = vld [vmem:[%s1825_s1 + $0x10] sm:$0xff] }
   0x9   :  { %1302 = vmatpush3.msk.msra.mxu1 %vm111_vm0, %v293_v6  ;;  %1292 = vmatprep.mubr.msk.f32.mxu1 %vm62_vm1, %v47_v8  ;;  %v279_v24 = vld [vmem:[%s1825_s1 + $0x18] sm:$0xff]  ;;  %v280_v25 = vld [vmem:[%s1825_s1 + $0x20] sm:$0xff]  ;;  %v281_v26 = vld [vmem:[%s1825_s1 + $0x28] sm:$0xff] }
   0xa   :  { %1303 = vmatprep.subr.mxu1 %v292_v9  ;;  %v282_v27 = vld [vmem:[%s1825_s1 + $0x30] sm:$0xff]  ;;  %v283_v28 = vld [vmem:[%s1825_s1 + $0x38] sm:$0xff]  ;;  %v284_v29 = vld [vmem:[%s1825_s1 + $0x40] sm:$0xff] }
   0xb   :  { %1281 = vmatmul.mubr.msk.f32.gmra.mxu0 %vm62_vm1, %v40_v10  ;;  %1293 = vmatmul.mubr.msk.f32.gmra.mxu1 %vm62_vm1, %v48_v11  ;;  %v285_v30 = vld [vmem:[%s1825_s1 + $0x48] sm:$0xff]  ;;  %v286_v31 = vld [vmem:[%s1825_s1 + $0x50] sm:$0xff]  ;;  %v287_v32 = vld [vmem:[%s1825_s1 + $0x58] sm:$0xff] }
   0xc   :  { %1283 = vmatprep.mubr.msk.f32.mxu0 %vm62_vm1, %v41_v12  ;;  %1295 = vmatprep.mubr.msk.f32.mxu1 %vm62_vm1, %v49_v13  ;;  %v288_v33 = vld [vmem:[%s1825_s1 + $0x60] sm:$0xff]  ;;  %v289_v34 = vld [vmem:[%s1825_s1 + $0x68] sm:$0xff]  ;;  %v290_v35 = vld [vmem:[%s1825_s1 + $0x70] sm:$0xff] }
   0xd   :  { %1304 = vmatpush3.msra.mxu1 %v292_v9  ;;  %v291_v36 = vld [vmem:[%s1825_s1 + $0x78] sm:$0xff]  ;;  %v513_v37 = vld [vmem:[%s1824_s6] sm:$0xff]  ;;  %v516_v38 = vld [vmem:[%s1826_s7 + $0x8] sm:$0x1f] }
   0xe   :  { %1357 = vmatprep.subr.msk.mxu1 %vm111_vm0, %v514_v18  ;;  %1329 = vmatprep.subr.msk.mxu0 %vm111_vm0, %v516_v38  ;;  %v515_v39 = vld [vmem:[%s1826_s7] sm:$0xff] }
   0xf   :  { %1284 = vmatmul.mubr.msk.f32.gmra.mxu0 %vm62_vm1, %v42_v14  ;;  %1296 = vmatmul.mubr.msk.f32.gmra.mxu1 %vm62_vm1, %v50_v15  ;;  %v1653_v41 = vld [vmem:[%s1827_s3] ss:$0 sm:$0xff] }
  0x10   :  { %1286 = vmatprep.mubr.msk.f32.mxu0 %vm62_vm1, %v43_v16  ;;  %1298 = vmatprep.mubr.msk.f32.mxu1 %vm62_vm1, %v51_v17  ;;  %v1672_v8 = vld [vmem:[%s1828_s5] ss:$0 sm:$0xff] }
  0x11   :  { %1330 = vmatpush3.msk.msra.mxu0 %vm111_vm0, %v516_v38 }
  0x12   :  { %1331 = vmatprep.subr.mxu0 %v515_v39 }
  0x13   :  { %1287 = vmatmul.mubr.msk.f32.gmra.mxu0 %vm62_vm1, %v44_v19  ;;  %1299 = vmatmul.mubr.msk.f32.gmra.mxu1 %vm62_vm1, %v52_v20 }
  0x14   :  { %1305 = vmatprep.mubr.msk.f32.mxu1 %vm62_vm1, %v276_v21  ;;  %1332 = vmatpush3.msra.mxu0 %v515_v39 }
  0x17   :  { %1306 = vmatmul.mubr.msk.f32.vlgmr.msra.gmra.mxu1 %vm62_vm1, %v277_v22 }
  0x18   :  { %1308 = vmatprep.mubr.msk.f32.mxu1 %vm62_vm1, %v278_v23  ;;  %1358 = vmatpush3.msk.msra.mxu1 %vm111_vm0, %v514_v18 }
  0x19   :  { %1359 = vmatprep.subr.mxu1 %v513_v37 }
  0x1a   :  { %1360 = vmatpush3.msra.mxu1 %v513_v37 }
  0x1b   :  { %1309 = vmatmul.mubr.msk.f32.gmra.mxu1 %vm62_vm1, %v279_v24 }
  0x1c   :  { %1311 = vmatprep.mubr.msk.f32.mxu1 %vm62_vm1, %v280_v25 }
  0x1f   :  { %1312 = vmatmul.mubr.msk.f32.gmra.mxu1 %vm62_vm1, %v281_v26 }
  0x20   :  { %1314 = vmatprep.mubr.msk.f32.mxu1 %vm62_vm1, %v282_v27 }
  0x23   :  { %1315 = vmatmul.mubr.msk.f32.gmra.mxu1 %vm62_vm1, %v283_v28 }
  0x24   :  { %1317 = vmatprep.mubr.msk.f32.mxu1 %vm62_vm1, %v284_v29 }
  0x27   :  { %1318 = vmatmul.mubr.msk.f32.gmra.mxu1 %vm62_vm1, %v285_v30 }
  0x28   :  { %1320 = vmatprep.mubr.msk.f32.mxu1 %vm62_vm1, %v286_v31 }
  0x2b   :  { %1321 = vmatmul.mubr.msk.f32.gmra.mxu1 %vm62_vm1, %v287_v32 }
  0x2c   :  { %1323 = vmatprep.mubr.msk.f32.mxu1 %vm62_vm1, %v288_v33 }
  0x2f   :  { %1324 = vmatmul.mubr.msk.f32.gmra.mxu1 %vm62_vm1, %v289_v34 }
  0x30   :  { %1326 = vmatprep.mubr.msk.f32.mxu1 %vm62_vm1, %v290_v35 }
  0x33   :  { %1327 = vmatmul.mubr.msk.f32.gmra.mxu1 %vm62_vm1, %v291_v36 }
  0xc7   :  { %v1279_v40 = vpop.f32.mrf.mxu0  ;;  %v1291_v42 = vpop.f32.mrf.mxu1 }
  0xc8   :  { %v187_v43 = vadd.f32 %v1279_v40, %v1653_v41  ;;  %v227_v12 = vadd.f32 %v1291_v42, %v1653_v41 }
  0xc9   :  { %v181_v44 = vpop.f32.mrf.mxu0  ;;  %v221_v45 = vpop.f32.mrf.mxu1 }
  0xca   :  { %v182_v46 = vadd.f32 %v1653_v41, %v181_v44  ;;  %v261_v47 = vmax.f32 %v187_v43, 0.0  ;;  %v222_v6 = vadd.f32 %v1653_v41, %v221_v45  ;;  %v269_v20 = vmax.f32 %v227_v12, 0.0 }
  0xcb   :  { %v1282_v48 = vpop.f32.mrf.mxu0  ;;  %v1294_v49 = vpop.f32.mrf.mxu1 }
  0xcc   :  { %v260_v50 = vmax.f32 %v182_v46, 0.0  ;;  %v197_v51 = vadd.f32 %v1282_v48, %v1653_v41  ;;  %v268_v15 = vmax.f32 %v222_v6, 0.0  ;;  %v237_v21 = vadd.f32 %v1294_v49, %v1653_v41 }
  0xcd   :  { %v191_v52 = vpop.f32.mrf.mxu0  ;;  %v231_v53 = vpop.f32.mrf.mxu1 }
  0xce   :  { %v192_v54 = vadd.f32 %v1653_v41, %v191_v52  ;;  %1361 = vmatprep.mubr.msk.f32.mxu1 %vm62_vm1, %v260_v50  ;;  %v263_v55 = vmax.f32 %v197_v51, 0.0  ;;  %v232_v16 = vadd.f32 %v1653_v41, %v231_v53  ;;  %v271_v30 = vmax.f32 %v237_v21, 0.0 }
  0xcf   :  { %v1285_v56 = vpop.f32.mrf.mxu0  ;;  %v1297_v57 = vpop.f32.mrf.mxu1  ;;  %1362 = vmatmul.mubr.msk.f32.vlgmr.msra.gmra.mxu1 %vm62_vm1, %v261_v47 }
  0xd0   :  { %v262_v58 = vmax.f32 %v192_v54, 0.0  ;;  %v207_v59 = vadd.f32 %v1285_v56, %v1653_v41  ;;  %v270_v25 = vmax.f32 %v232_v16, 0.0  ;;  %v247_v31 = vadd.f32 %v1297_v57, %v1653_v41 }
  0xd1   :  { %v201_v60 = vpop.f32.mrf.mxu0  ;;  %v241_v61 = vpop.f32.mrf.mxu1 }
  0xd2   :  { %v202_v62 = vadd.f32 %v1653_v41, %v201_v60  ;;  %1364 = vmatprep.mubr.msk.f32.mxu1 %vm62_vm1, %v262_v58  ;;  %v265_v63 = vmax.f32 %v207_v59, 0.0  ;;  %v242_v26 = vadd.f32 %v1653_v41, %v241_v61  ;;  %v273_v40 = vmax.f32 %v247_v31, 0.0 }
  0xd3   :  { %v1288_v0 = vpop.f32.mrf.mxu0  ;;  %v1300_v1 = vpop.f32.mrf.mxu1  ;;  %1365 = vmatmul.mubr.msk.f32.gmra.mxu1 %vm62_vm1, %v263_v55 }
  0xd4   :  { %v264_v2 = vmax.f32 %v202_v62, 0.0  ;;  %v217_v3 = vadd.f32 %v1288_v0, %v1653_v41  ;;  %v272_v35 = vmax.f32 %v242_v26, 0.0  ;;  %v257_v42 = vadd.f32 %v1300_v1, %v1653_v41 }
  0xd5   :  { %v211_v4 = vpop.f32.mrf.mxu0  ;;  %v251_v5 = vpop.f32.mrf.mxu1 }
  0xd6   :  { %v212_v7 = vadd.f32 %v1653_v41, %v211_v4  ;;  %1367 = vmatprep.mubr.msk.f32.mxu1 %vm62_vm1, %v264_v2  ;;  %v267_v9 = vmax.f32 %v217_v3, 0.0  ;;  %v252_v36 = vadd.f32 %v1653_v41, %v251_v5  ;;  %v275_v50 = vmax.f32 %v257_v42, 0.0 }
  0xd7   :  { %v1307_v10 = vpop.f32.mrf.mxu1  ;;  %1368 = vmatmul.mubr.msk.f32.gmra.mxu1 %vm62_vm1, %v265_v63 }
  0xd8   :  { %v266_v11 = vmax.f32 %v212_v7, 0.0  ;;  %v424_v13 = vadd.f32 %v1307_v10, %v1672_v8  ;;  %v274_v46 = vmax.f32 %v252_v36, 0.0 }
  0xd9   :  { %v418_v14 = vpop.f32.mrf.mxu1 }
  0xda   :  { %v419_v17 = vadd.f32 %v1672_v8, %v418_v14  ;;  %1370 = vmatprep.mubr.msk.f32.mxu1 %vm62_vm1, %v266_v11  ;;  %v498_v22 = vmax.f32 %v424_v13, 0.0  ;;  %v1426_v11 = vmov 0.0  }
  0xdb   :  { %v1310_v18 = vpop.f32.mrf.mxu1  ;;  %1371 = vmatmul.mubr.msk.f32.gmra.mxu1 %vm62_vm1, %v267_v9  ;;  %1385 = vmatprep.subr.mxu0 %v1426_v11 }
  0xdc   :  { %v497_v19 = vmax.f32 %v419_v17, 0.0  ;;  %1373 = vmatprep.mubr.msk.f32.mxu1 %vm62_vm1, %v268_v15  ;;  %v434_v23 = vadd.f32 %v1310_v18, %v1672_v8 }
  0xdd   :  { %v428_v24 = vpop.f32.mrf.mxu1 }
  0xde   :  { %v429_v27 = vadd.f32 %v1672_v8, %v428_v24  ;;  %1333 = vmatprep.mubr.msk.f32.mxu0 %vm62_vm1, %v497_v19  ;;  %v500_v32 = vmax.f32 %v434_v23, 0.0 }
  0xdf   :  { %v1313_v28 = vpop.f32.mrf.mxu1  ;;  %1334 = vmatmul.mubr.msk.f32.vlgmr.msra.gmra.mxu0 %vm62_vm1, %v498_v22  ;;  %1374 = vmatmul.mubr.msk.f32.gmra.mxu1 %vm62_vm1, %v269_v20 }
  0xe0   :  { %v499_v29 = vmax.f32 %v429_v27, 0.0  ;;  %1376 = vmatprep.mubr.msk.f32.mxu1 %vm62_vm1, %v270_v25  ;;  %v444_v33 = vadd.f32 %v1313_v28, %v1672_v8 }
  0xe1   :  { %v438_v34 = vpop.f32.mrf.mxu1 }
  0xe2   :  { %v439_v37 = vadd.f32 %v1672_v8, %v438_v34  ;;  %1336 = vmatprep.mubr.msk.f32.mxu0 %vm62_vm1, %v499_v29  ;;  %v502_v43 = vmax.f32 %v444_v33, 0.0 }
  0xe3   :  { %v1316_v38 = vpop.f32.mrf.mxu1  ;;  %1337 = vmatmul.mubr.msk.f32.gmra.mxu0 %vm62_vm1, %v500_v32  ;;  %1377 = vmatmul.mubr.msk.f32.gmra.mxu1 %vm62_vm1, %v271_v30 }
  0xe4   :  { %v501_v39 = vmax.f32 %v439_v37, 0.0  ;;  %1379 = vmatprep.mubr.msk.f32.mxu1 %vm62_vm1, %v272_v35  ;;  %v454_v44 = vadd.f32 %v1316_v38, %v1672_v8 }
  0xe5   :  { %v448_v45 = vpop.f32.mrf.mxu1 }
  0xe6   :  { %v449_v47 = vadd.f32 %v1672_v8, %v448_v45  ;;  %1339 = vmatprep.mubr.msk.f32.mxu0 %vm62_vm1, %v501_v39  ;;  %v504_v51 = vmax.f32 %v454_v44, 0.0 }
  0xe7   :  { %v1319_v48 = vpop.f32.mrf.mxu1  ;;  %1340 = vmatmul.mubr.msk.f32.gmra.mxu0 %vm62_vm1, %v502_v43  ;;  %1380 = vmatmul.mubr.msk.f32.gmra.mxu1 %vm62_vm1, %v273_v40 }
  0xe8   :  { %v503_v49 = vmax.f32 %v449_v47, 0.0  ;;  %1382 = vmatprep.mubr.msk.f32.mxu1 %vm62_vm1, %v274_v46  ;;  %v464_v41 = vadd.f32 %v1319_v48, %v1672_v8  ;;  %v1749_v47 = vld [vmem:[%s1829_s8] ss:$0 sm:$0xff] }
  0xe9   :  { %v458_v52 = vpop.f32.mrf.mxu1 }
  0xea   :  { %v459_v53 = vadd.f32 %v1672_v8, %v458_v52  ;;  %1342 = vmatprep.mubr.msk.f32.mxu0 %vm62_vm1, %v503_v49  ;;  %v506_v56 = vmax.f32 %v464_v41, 0.0 }
  0xeb   :  { %v1322_v54 = vpop.f32.mrf.mxu1  ;;  %1343 = vmatmul.mubr.msk.f32.gmra.mxu0 %vm62_vm1, %v504_v51  ;;  %1383 = vmatmul.mubr.msk.f32.gmra.mxu1 %vm62_vm1, %v275_v50 }
  0xec   :  { %v505_v55 = vmax.f32 %v459_v53, 0.0  ;;  %v474_v57 = vadd.f32 %v1322_v54, %v1672_v8 }
  0xed   :  { %v468_v58 = vpop.f32.mrf.mxu1 }
  0xee   :  { %v469_v59 = vadd.f32 %v1672_v8, %v468_v58  ;;  %1345 = vmatprep.mubr.msk.f32.mxu0 %vm62_vm1, %v505_v55  ;;  %v508_v62 = vmax.f32 %v474_v57, 0.0 }
  0xef   :  { %v1325_v60 = vpop.f32.mrf.mxu1  ;;  %1346 = vmatmul.mubr.msk.f32.gmra.mxu0 %vm62_vm1, %v506_v56 }
  0xf0   :  { %v507_v61 = vmax.f32 %v469_v59, 0.0  ;;  %v484_v63 = vadd.f32 %v1325_v60, %v1672_v8 }
  0xf1   :  { %v478_v0 = vpop.f32.mrf.mxu1 }
  0xf2   :  { %v479_v1 = vadd.f32 %v1672_v8, %v478_v0  ;;  %1348 = vmatprep.mubr.msk.f32.mxu0 %vm62_vm1, %v507_v61  ;;  %v510_v4 = vmax.f32 %v484_v63, 0.0 }
  0xf3   :  { %v1328_v2 = vpop.f32.mrf.mxu1  ;;  %1349 = vmatmul.mubr.msk.f32.gmra.mxu0 %vm62_vm1, %v508_v62 }
  0xf4   :  { %v509_v3 = vmax.f32 %v479_v1, 0.0  ;;  %v494_v5 = vadd.f32 %v1328_v2, %v1672_v8 }
  0xf5   :  { %v488_v6 = vpop.f32.mrf.mxu1 }
  0xf6   :  { %v489_v7 = vadd.f32 %v1672_v8, %v488_v6  ;;  %1351 = vmatprep.mubr.msk.f32.mxu0 %vm62_vm1, %v509_v3  ;;  %v512_v10 = vmax.f32 %v494_v5, 0.0 }
  0xf7   :  { %1352 = vmatmul.mubr.msk.f32.gmra.mxu0 %vm62_vm1, %v510_v4 }
  0xf8   :  { %v511_v9 = vmax.f32 %v489_v7, 0.0 }
  0xfa   :  { %1354 = vmatprep.mubr.msk.f32.mxu0 %vm62_vm1, %v511_v9 }
  0xfb   :  { %1355 = vmatmul.mubr.msk.f32.gmra.mxu0 %vm62_vm1, %v512_v10 }
  0xfc   :  { %1417 = vmatprep.mubr.msk.f32.mxu0 %vm1427_vm2, %v1426_v11 }
 0x18f   :  { %v1363_v12 = vpop.f32.mrf.mxu1 }
 0x191   :  { %v830_v13 = vpop.f32.mrf.mxu1 }
 0x193   :  { %v1366_v14 = vpop.f32.mrf.mxu1 }
 0x195   :  { %v840_v8 = vpop.f32.mrf.mxu1 }
 0x197   :  { %v1726_v15 = vpop.f32.mrf.mxu1 }
 0x199   :  { %v1728_v16 = vpop.f32.mrf.mxu1 }
 0x19b   :  { %v1730_v17 = vpop.f32.mrf.mxu1 }
 0x19d   :  { %v1732_v18 = vpop.f32.mrf.mxu1 }
 0x19f   :  { %v1335_v19 = vpop.f32.mrf.mxu0  ;;  %v1375_v21 = vpop.f32.mrf.mxu1 }
 0x1a0   :  { %v1734_v20 = vadd.f32 %v1363_v12, %v1335_v19 }
 0x1a1   :  { %v634_v22 = vpop.f32.mrf.mxu0  ;;  %v870_v26 = vpop.f32.mrf.mxu1 }
 0x1a2   :  { %v1736_v23 = vadd.f32 %v830_v13, %v634_v22 }
 0x1a3   :  { %v1338_v24 = vpop.f32.mrf.mxu0  ;;  %v1378_v30 = vpop.f32.mrf.mxu1 }
 0x1a4   :  { %v1738_v25 = vadd.f32 %v1366_v14, %v1338_v24 }
 0x1a5   :  { %v644_v27 = vpop.f32.mrf.mxu0  ;;  %v880_v33 = vpop.f32.mrf.mxu1 }
 0x1a6   :  { %v1740_v28 = vadd.f32 %v840_v8, %v644_v27  ;;  %v919_v22 = vadd.f32 %v1749_v47, %v1738_v25  ;;  %v917_v27 = vadd.f32 %v1749_v47, %v1734_v20  ;;  %v948_v20 = vld [vmem:[%s1830_s9] sm:$0x1] }
 0x1a7   :  { %v1742_v29 = vpop.f32.mrf.mxu0  ;;  %v1381_v36 = vpop.f32.mrf.mxu1 }
 0x1a8   :  { %v856_v13 = vadd.f32 %v1726_v15, %v1742_v29  ;;  %v933_v25 = vmax.f32 %v917_v27, 0.0 }
 0x1a9   :  { %v1744_v31 = vpop.f32.mrf.mxu0  ;;  %v890_v39 = vpop.f32.mrf.mxu1 }
 0x1ab   :  { %v1344_v32 = vpop.f32.mrf.mxu0  ;;  %v1384_v43 = vpop.f32.mrf.mxu1 }
 0x1ac   :  { %v866_v5 = vadd.f32 %v1730_v17, %v1344_v32  ;;  %v921_v17 = vadd.f32 %v1749_v47, %v856_v13 }
 0x1ad   :  { %v664_v34 = vpop.f32.mrf.mxu0  ;;  %v900_v48 = vpop.f32.mrf.mxu1 }
 0x1ae   :  { %v923_v9 = vadd.f32 %v1749_v47, %v866_v5  ;;  %v861_v10 = vadd.f32 %v1732_v18, %v664_v34  ;;  %v851_v18 = vadd.f32 %v1728_v16, %v1744_v31  ;;  %v935_v16 = vmax.f32 %v919_v22, 0.0 }
 0x1af   :  { %v1347_v35 = vpop.f32.mrf.mxu0  ;;  %v1072_v31 = vlaneseq }
 0x1b0   :  { %v876_v63 = vadd.f32 %v1375_v21, %v1347_v35  ;;  %v939_v14 = vmax.f32 %v923_v9, 0.0  ;;  %v922_v8 = vadd.f32 %v1749_v47, %v861_v10  ;;  %v937_v21 = vmax.f32 %v921_v17, 0.0 }
 0x1b1   :  { %v674_v37 = vpop.f32.mrf.mxu0  ;;  %v920_v15 = vadd.f32 %v1749_v47, %v851_v18  ;;  %v1073_v32 = vand.u32 127, %v1072_v31 }
 0x1b2   :  { %v925_v2 = vadd.f32 %v1749_v47, %v876_v63  ;;  %v871_v3 = vadd.f32 %v870_v26, %v674_v37  ;;  %v938_v19 = vmax.f32 %v922_v8, 0.0  ;;  %v918_v26 = vadd.f32 %v1749_v47, %v1740_v28 }
 0x1b3   :  { %v1350_v38 = vpop.f32.mrf.mxu0  ;;  %v936_v24 = vmax.f32 %v920_v15, 0.0  ;;  %vm1076_vm3 = vcmp.lt.s32.totalorder %v1073_v32, 8 }
 0x1b4   :  { %v886_v57 = vadd.f32 %v1378_v30, %v1350_v38  ;;  %v941_v6 = vmax.f32 %v925_v2, 0.0  ;;  %v924_v7 = vadd.f32 %v1749_v47, %v871_v3  ;;  %v934_v29 = vmax.f32 %v918_v26, 0.0 }
 0x1b5   :  { %v684_v40 = vpop.f32.mrf.mxu0  ;;  %v916_v30 = vadd.f32 %v1749_v47, %v1736_v23 }
 0x1b6   :  { %v927_v60 = vadd.f32 %v1749_v47, %v886_v57  ;;  %v881_v61 = vadd.f32 %v880_v33, %v684_v40  ;;  %v940_v12 = vmax.f32 %v924_v7, 0.0 }
 0x1b7   :  { %v1353_v42 = vpop.f32.mrf.mxu0  ;;  %v932_v28 = vmax.f32 %v916_v30, 0.0 }
 0x1b8   :  { %v896_v41 = vadd.f32 %v1381_v36, %v1353_v42  ;;  %v943_v0 = vmax.f32 %v927_v60, 0.0  ;;  %v926_v1 = vadd.f32 %v1749_v47, %v881_v61 }
 0x1b9   :  { %v694_v44 = vpop.f32.mrf.mxu0 }
 0x1ba   :  { %v929_v54 = vadd.f32 %v1749_v47, %v896_v41  ;;  %v891_v55 = vadd.f32 %v890_v39, %v694_v44  ;;  %v942_v4 = vmax.f32 %v926_v1, 0.0 }
 0x1bb   :  { %v1356_v45 = vpop.f32.mrf.mxu0 }
 0x1bc   :  { %v906_v46 = vadd.f32 %v1384_v43, %v1356_v45  ;;  %v945_v58 = vmax.f32 %v929_v54, 0.0  ;;  %v928_v59 = vadd.f32 %v1749_v47, %v891_v55 }
 0x1bd   :  { %v704_v49 = vpop.f32.mrf.mxu0 }
 0x1be   :  { %v931_v50 = vadd.f32 %v1749_v47, %v906_v46  ;;  %v901_v51 = vadd.f32 %v900_v48, %v704_v49  ;;  %v944_v62 = vmax.f32 %v928_v59, 0.0 }
 0x1c0   :  { %v947_v52 = vmax.f32 %v931_v50, 0.0  ;;  %v930_v53 = vadd.f32 %v1749_v47, %v901_v51 }
 0x1c2   :  { %1386 = vmatpush3.xpose.msk.msra.mxu0 %vm62_vm1, %v947_v52  ;;  %v946_v56 = vmax.f32 %v930_v53, 0.0 }
 0x1c3   :  { %1387 = vmatprep.subr.mxu0 %v1426_v11 }
 0x1c6   :  { %1388 = vmatpush3.xpose.msk.msra.mxu0 %vm62_vm1, %v946_v56 }
 0x1c7   :  { %1389 = vmatprep.subr.mxu0 %v1426_v11 }
 0x1ca   :  { %1390 = vmatpush3.xpose.msk.msra.mxu0 %vm62_vm1, %v945_v58 }
 0x1cb   :  { %1391 = vmatprep.subr.mxu0 %v1426_v11 }
 0x1ce   :  { %1392 = vmatpush3.xpose.msk.msra.mxu0 %vm62_vm1, %v944_v62 }
 0x1cf   :  { %1393 = vmatprep.subr.mxu0 %v1426_v11 }
 0x1d2   :  { %1394 = vmatpush3.xpose.msk.msra.mxu0 %vm62_vm1, %v943_v0 }
 0x1d3   :  { %1395 = vmatprep.subr.mxu0 %v1426_v11 }
 0x1d6   :  { %1396 = vmatpush3.xpose.msk.msra.mxu0 %vm62_vm1, %v942_v4 }
 0x1d7   :  { %1397 = vmatprep.subr.mxu0 %v1426_v11 }
 0x1da   :  { %1398 = vmatpush3.xpose.msk.msra.mxu0 %vm62_vm1, %v941_v6 }
 0x1db   :  { %1399 = vmatprep.subr.mxu0 %v1426_v11 }
 0x1de   :  { %1400 = vmatpush3.xpose.msk.msra.mxu0 %vm62_vm1, %v940_v12 }
 0x1df   :  { %1401 = vmatprep.subr.mxu0 %v1426_v11 }
 0x1e2   :  { %1402 = vmatpush3.xpose.msk.msra.mxu0 %vm62_vm1, %v939_v14 }
 0x1e3   :  { %1403 = vmatprep.subr.mxu0 %v1426_v11 }
 0x1e6   :  { %1404 = vmatpush3.xpose.msk.msra.mxu0 %vm62_vm1, %v938_v19 }
 0x1e7   :  { %1405 = vmatprep.subr.mxu0 %v1426_v11 }
 0x1ea   :  { %1406 = vmatpush3.xpose.msk.msra.mxu0 %vm62_vm1, %v937_v21 }
 0x1eb   :  { %1407 = vmatprep.subr.mxu0 %v1426_v11 }
 0x1ee   :  { %1408 = vmatpush3.xpose.msk.msra.mxu0 %vm62_vm1, %v936_v24 }
 0x1ef   :  { %1409 = vmatprep.subr.mxu0 %v1426_v11 }
 0x1f2   :  { %1410 = vmatpush3.xpose.msk.msra.mxu0 %vm62_vm1, %v935_v16 }
 0x1f3   :  { %1411 = vmatprep.subr.mxu0 %v1426_v11 }
 0x1f6   :  { %1412 = vmatpush3.xpose.msk.msra.mxu0 %vm62_vm1, %v934_v29 }
 0x1f7   :  { %1413 = vmatprep.subr.mxu0 %v1426_v11 }
 0x1fa   :  { %1414 = vmatpush3.xpose.msk.msra.mxu0 %vm62_vm1, %v933_v25 }
 0x1fb   :  { %1415 = vmatprep.subr.mxu0 %v1426_v11 }
 0x1fe   :  { %1416 = vmatpush3.xpose.msk.msra.mxu0 %vm62_vm1, %v932_v28 }
 0x201   :  { %1418 = vmatmul.mubr.msk.f32.vlgmr.msra.gmra.mxu0 %vm62_vm1, %v948_v20 }
 0x2c1   :  { %v1066_v33 = vpop.f32.mrf.mxu0 }
 0x2c2   :  { %1070 = vst [vmem:[%s1831_s10] sm:$0x1] %v1066_v33  ;;  %v1077_v23 = vsel %vm1076_vm3, %v1066_v33, 0.0 }
 0x2c3   :  { %v1419_v11 = vpop.f32.mrf.mxu0  ;;  %v1079_v34 = vsel %vm1078_vm4, %v1077_v23, 0.0  ;;  %v1083_v35 = vmul.f32 %v1077_v23, %v1077_v23 }
 0x2c4   :  { %1080 = vadd.xlane.f32.xlu0 %v1079_v34 }
 0x2c5   :  { %v1084_v36 = vsel %vm1078_vm4, %v1083_v35, 0.0 }
 0x2c8   :  { %1085 = vadd.xlane.f32.xlu0 %v1084_v36 }
 0x34d   :  { %v1081_v37 = vpop.xlane.xlu0 %1080 }
 0x34e   :  { %1082 = vst [vmem:[%s1832_s11] sm:$0x1] %v1081_v37 }
 0x351   :  { %v1086_v38 = vpop.xlane.xlu0 %1085 }
 0x352   :  { %1087 = vst [vmem:[%s1832_s11 + $0x1] sm:$0x1] %v1086_v38 }

</bundles_post_ra>
